<compile_context>
chip_gen: v7x
topology: tpu7x:2x2x1
jax: 0.10.0
libtpu: 0.0.40
codegen_flags: <defaults>
</compile_context>

<pallas_src>
import functools

import jax
import jax.numpy as jnp
from jax import lax
from jax.experimental import pallas as pl
from jax.experimental.pallas import tpu as pltpu

_LANE = 128


def _fold_lane_groups(x):
    """(tr, thw) f32 -> (tr, 1): VPU lane-group adds, then a single XLU reduce."""
    tr, thw = x.shape
    if thw % _LANE == 0 and thw > _LANE:
        x = x.reshape(tr, thw // _LANE, _LANE).sum(axis=1)  # layout-preserving VPU adds
    return jnp.sum(x, axis=-1, keepdims=True)               # one cross-lane reduce


def _gap_kernel_single(x_ref, o_ref, *, inv_hw):
    """Fast path: whole H*W in one block. No scratch, no reduction grid axis."""
    x = x_ref[...].astype(jnp.float32)
    o_ref[...] = (_fold_lane_groups(x) * inv_hw).astype(o_ref.dtype)


def _gap_kernel_tiled(x_ref, o_ref, acc_ref, *, inv_hw, rem, n_hw_tiles):
    """Tiled spatial reduction with f32 (tr, 128) accumulator.

    `rem` is the static overhang of the last spatial tile (0 if H*W divides the
    tile width); masking happens only on the last reduction step.
    """
    j = pl.program_id(1)
    last = n_hw_tiles - 1

    @pl.when(j == 0)
    def _():
        acc_ref[...] = jnp.zeros_like(acc_ref)

    x = x_ref[...].astype(jnp.float32)
    tr, thw = x.shape

    def fold(v):
        if thw > _LANE:
            return v.reshape(tr, thw // _LANE, _LANE).sum(axis=1)  # (tr, 128)
        return v

    if rem:
        # Steady-state tiles: pure load + add (no iota / compare / select).
        @pl.when(j != last)
        def _():
            acc_ref[...] += fold(x)

        # Last tile overhangs H*W: mask against the static remainder using a
        # small (1, thw) iota broadcast (no j*thw vector add needed).
        @pl.when(j == last)
        def _():
            lane = lax.broadcasted_iota(jnp.int32, (1, thw), 1)
            acc_ref[...] += fold(jnp.where(lane < rem, x, 0.0))
    else:
        acc_ref[...] += fold(x)

    @pl.when(j == last)
    def _():
        total = jnp.sum(acc_ref[...], axis=-1, keepdims=True)  # single XLU reduce
        o_ref[...] = (total * inv_hw).astype(o_ref.dtype)


def _round_down(x, m):
    return (x // m) * m


def _round_up(x, m):
    return ((x + m - 1) // m) * m


def global_avg_pool2d(x, *, block_bytes=4 * 1024 * 1024):
    """x: (N, C, H, W) -> (N, C), mean over spatial dims (matches torch .mean(dim=2)).

    `block_bytes` is the target footprint of one input block (double-buffered by
    the Pallas pipeline). Default 4 MiB keeps the total per-step VMEM use at
    ~8-13 MiB, inside the scoped-VMEM defaults of v5e/v6e/v7x.
    """
    N, C, H, W = x.shape
    rows = N * C
    hw = H * W
    x2 = x.reshape(rows, hw)  # contiguous reshape: free, no HBM traffic

    itemsize = jnp.dtype(x.dtype).itemsize
    # Sublane packing granularity: 8 (f32), 16 (bf16/f16), 32 (int8/fp8).
    sub = max(8, (4 // max(1, itemsize)) * 8)
    inv_hw = 1.0 / hw

    cost = pl.CostEstimate(
        flops=rows * hw,  # ~1 add per element
        transcendentals=0,
        bytes_accessed=rows * hw * itemsize + rows * itemsize,
    )

    def pick_tr(bytes_per_row):
        """Row-tile height for a given per-row byte footprint."""
        tr = max(sub, _round_down(block_bytes // max(1, bytes_per_row), sub))
        if tr >= rows:
            if rows >= 2 * sub:
                # Keep >= 2 row tiles so the "parallel" row axis can shard
                # across v7x's two TensorCores (free on single-TC v5e/v6e).
                tr = _round_up(pl.cdiv(rows, 2), sub)
            else:
                tr = rows  # tiny problem: single full-extent row tile
        return tr

    if hw * itemsize * sub <= block_bytes:
        # ---- Fast path: whole H*W per block, 1-D grid over row tiles. -------
        tr = pick_tr(hw * itemsize)
        grid = (pl.cdiv(rows, tr),)
        out = pl.pallas_call(
            functools.partial(_gap_kernel_single, inv_hw=inv_hw),
            out_shape=jax.ShapeDtypeStruct((rows, 1), x.dtype),
            grid_spec=pltpu.PrefetchScalarGridSpec(
                num_scalar_prefetch=0,
                grid=grid,
                in_specs=[pl.BlockSpec((tr, hw), lambda i: (i, 0))],
                out_specs=pl.BlockSpec((tr, 1), lambda i: (i, 0)),
            ),
            compiler_params=pltpu.CompilerParams(
                dimension_semantics=("parallel",),
            ),
            cost_estimate=cost,
        )(x2)
    else:
        # ---- Huge H*W: tile the reduction axis in multiples of 128 lanes. ---
        thw = max(_LANE, _round_down(block_bytes // (sub * itemsize), _LANE))
        thw = min(thw, max(_LANE, _round_down(hw, _LANE)))
        tr = pick_tr(thw * itemsize)
        n_hw_tiles = pl.cdiv(hw, thw)
        rem = hw % thw  # static overhang of the last spatial tile (0 => no mask)
        grid = (pl.cdiv(rows, tr), n_hw_tiles)
        out = pl.pallas_call(
            functools.partial(
                _gap_kernel_tiled, inv_hw=inv_hw, rem=rem, n_hw_tiles=n_hw_tiles
            ),
            out_shape=jax.ShapeDtypeStruct((rows, 1), x.dtype),
            grid_spec=pltpu.PrefetchScalarGridSpec(
                num_scalar_prefetch=0,
                grid=grid,
                in_specs=[pl.BlockSpec((tr, thw), lambda i, j: (i, j))],
                out_specs=pl.BlockSpec((tr, 1), lambda i, j: (i, 0)),
                scratch_shapes=[pltpu.VMEM((tr, _LANE), jnp.float32)],
            ),
            compiler_params=pltpu.CompilerParams(
                # Row axis independent (megacore-shardable); spatial axis is the
                # reduction over which the output block is revisited.
                dimension_semantics=("parallel", "arbitrary"),
            ),
            cost_estimate=cost,
        )(x2)

    return out.reshape(N, C)


if __name__ == "__main__":
    key = jax.random.PRNGKey(0)
    k1, k2, k3, k4, k5 = jax.random.split(key, 5)

    # 1) Primary check at the module-consistent small shape (fast path).
    N, C, H, W = 2, 4, 16, 16
    x = jax.random.normal(k1, (N, C, H, W), dtype=jnp.float32)
    out = jax.block_until_ready(global_avg_pool2d(x))
    ref = x.reshape(N, C, -1).mean(axis=2)
    assert out.shape == (N, C)
    assert jnp.allclose(out, ref, atol=1e-5, rtol=1e-5), (out, ref)

    # 2) Tiled-reduction path with a ragged last spatial tile and rows not a
    #    multiple of 8 (forced by a tiny block budget).
    x2 = jax.random.normal(k2, (2, 3, 20, 20), dtype=jnp.float32)
    out2 = jax.block_until_ready(global_avg_pool2d(x2, block_bytes=8 * 1024))
    ref2 = x2.reshape(2, 3, -1).mean(axis=2)
    assert jnp.allclose(out2, ref2, atol=1e-5, rtol=1e-5), (out2, ref2)

    # 3) Fast path with multiple row tiles and a ragged last ROW tile.
    x3 = jax.random.normal(k3, (4, 5, 10, 10), dtype=jnp.float32)
    out3 = jax.block_until_ready(global_avg_pool2d(x3, block_bytes=4 * 1024))
    ref3 = x3.reshape(4, 5, -1).mean(axis=2)
    assert jnp.allclose(out3, ref3, atol=1e-5, rtol=1e-5), (out3, ref3)

    # 4) Megacore row-split path (rows >= 16 and all rows fit in one tile).
    x4 = jax.random.normal(k4, (4, 4, 8, 8), dtype=jnp.float32)
    out4 = jax.block_until_ready(global_avg_pool2d(x4))
    ref4 = x4.reshape(4, 4, -1).mean(axis=2)
    assert jnp.allclose(out4, ref4, atol=1e-5, rtol=1e-5), (out4, ref4)

    # 5) Packed-dtype (bf16) path: f32 accumulation, bf16 store.
    x5 = jax.random.normal(k5, (2, 4, 16, 16), dtype=jnp.bfloat16)
    out5 = jax.block_until_ready(global_avg_pool2d(x5))
    ref5 = x5.astype(jnp.float32).reshape(2, 4, -1).mean(axis=2)
    assert jnp.allclose(out5.astype(jnp.float32), ref5, atol=1e-2, rtol=1e-2)

    print("KERNEL_OK")
</pallas_src>

<mosaic_0001>
module attributes {stable_mosaic.version = 11 : i64} {
  func.func @_gap_kernel_single(%arg0: i32, %arg1: memref<8x256xf32, #tpu.memory_space<vmem>>, %arg2: memref<8x1xf32, #tpu.memory_space<vmem>>) attributes {dimension_semantics = [#tpu.dimension_semantics<parallel>], iteration_bounds = array<i64: 1>, scalar_prefetch = 0 : i64, scratch_operands = 0 : i64, tpu.core_type = #tpu.core_type<tc>, window_params = [{transform_indices = @transform_0, window_bounds = array<i64: 8, 256>}, {transform_indices = @transform_1, window_bounds = array<i64: 8, 1>}]} {
    %c0 = arith.constant 0 : index
    %c0_0 = arith.constant 0 : index
    %0 = vector.load %arg1[%c0, %c0_0] : memref<8x256xf32, #tpu.memory_space<vmem>>, vector<8x256xf32>
    %1 = vector.shape_cast %0 : vector<8x256xf32> to vector<8x2x128xf32>
    %cst = arith.constant dense<0.000000e+00> : vector<8x128xf32>
    %2 = vector.multi_reduction <add>, %1, %cst [1] : vector<8x2x128xf32> to vector<8x128xf32>
    %cst_1 = arith.constant dense<0.000000e+00> : vector<8xf32>
    %3 = vector.multi_reduction <add>, %2, %cst_1 [1] : vector<8x128xf32> to vector<8xf32>
    %4 = vector.shape_cast %3 : vector<8xf32> to vector<8x1xf32>
    %cst_2 = arith.constant 3.906250e-03 : f32
    %5 = vector.broadcast %cst_2 : f32 to vector<8x1xf32>
    %6 = arith.mulf %4, %5 : vector<8x1xf32>
    %c0_3 = arith.constant 0 : index
    %c0_4 = arith.constant 0 : index
    %7 = vector.load %arg2[%c0_3, %c0_4] : memref<8x1xf32, #tpu.memory_space<vmem>>, vector<8x1xf32>
    tpu.vector_store %arg2[%c0_3, %c0_4], %6 {strides = array<i32>} : memref<8x1xf32, #tpu.memory_space<vmem>>, vector<8x1xf32>,
    return
  }
  func.func @transform_0(%arg0: i32) -> (i32, i32) {
    %c0_i32 = arith.constant 0 : i32
    %c0_i32_0 = arith.constant 0 : i32
    return %arg0, %c0_i32 : i32, i32
  }
  func.func @transform_1(%arg0: i32) -> (i32, i32) {
    %c0_i32 = arith.constant 0 : i32
    %c0_i32_0 = arith.constant 0 : i32
    return %arg0, %c0_i32 : i32, i32
  }
}

</mosaic_0001>

<bundles_post_ra>
// kernel: tpu_custom_call.1
= control target key start
LH: loop header
LB: loop body
LE: loop exit
PB: predicated region body
PF: predicated region fallthrough
CT: control target
= control target key end

     0   :  { %6 = vsyncpa [#allocation3], 0  ;;  %s206_s6 = smov [#allocation2]   ;;  %s244_s0 = inlined_call_operand.hbm [shape: f32[8,256], index: 0, kind: input, shape index: {}]   ;;  %s245_s1 = inlined_call_operand.vmem [shape: f32[8,1], index: 1, kind: output, shape index: {}]  }
   0x1   :  { %s13_s7 = sshll.u32 %s206_s6, 4  ;;  %s182_s10 = scalar_lea.hbm %s244_s0, 256  ;;  %s14_s7 = int_to_ptr.vmem [resolvable:$true] %s13_s7 }
   0x2   :  { %p183_p0 = scmp.ne.s32.totalorder %s244_s0, %s182_s10  ;;  %p186_p1 = scmp.lt.u32.totalorder %s182_s10, %s244_s0 }
   0x4   :  { %p188_p2 = pnand %p186_p1, %p183_p0 }
   0x6   :  { %191 = shalt.err (!%p188_p2)
}
   0x7   :  { %s192_s15 = scalar_lea.vmem %s14_s7, 256  ;;  %p197_p4 = scmp.lt.s32.totalorder %s14_s7, %s14_s7 }
   0x8   :  { %p193_p3 = scmp.ne.s32.totalorder %s14_s7, %s192_s15  ;;  %p198_p5 = scmp.lt.s32.totalorder %s192_s15, %s192_s15 }
   0xa   :  { %p199_p6 = por %p198_p5, %p197_p4 }
   0xc   :  { %p200_p7 = pnand %p199_p6, %p193_p3 }
   0xe   :  { %203 = shalt.err (!%p200_p7)
}
   0xf   :  { %16 = dma.hbm_to_vmem [thread:$0]  %s244_s0, 256, %s14_s7, [#allocation3]  }
  0x10   :  { %204 = dma.done.wait [#allocation3], 256  }
  0x11   :  { %205 = vsyncadd [#allocation3], 4294967040  ;;  %v26_v0 = vlaneseq  ;;  %v207_v1 = vmov 1983009808   ;;  %v208_v4 = vmov 1934713408  }
  0x12   :  { %v24_v2 = vunpack.c.l.s4 %v207_v1  ;;  %v55_v5 = vunpack.c.l.s4 %v208_v4  ;;  %v20_v9 = vld [vmem:[#allocation2] sm:$0xff]  ;;  %v21_v10 = vld [vmem:[#allocation2 + $0x8] sm:$0xff]  ;;  %v209_v12 = vmov 0.0   ;;  %vm88_vm0 = vcmask 1041408  }
  0x13   :  { %v27_v3 = vshrl.u32 %v26_v0, 7  ;;  %v22_v13 = vcombine.high %v20_v9, %v209_v12  ;;  %v37_v15 = vcombine.high %v21_v10, %v209_v12  ;;  %vm153_vm1 = vcmask 1041409  }
  0x14   :  { %v25_v6 = vunpack.c.0.s8 %v24_v2  ;;  %v56_v7 = vunpack.c.0.s8 %v55_v5  ;;  %vm155_vm2 = vcmask 1042434   ;;  %vm157_vm3 = vcmask 1043459  }
  0x15   :  { %vm159_vm4 = vcmask 1044484   ;;  %vm161_vm5 = vcmask 1045509   ;;  %vm163_vm6 = vcmask 1046534   ;;  %vm165_vm7 = vcmask 1047559  }
  0x16   :  { %v28_v8 = vsub.s32 %v25_v6, %v27_v3  ;;  %v59_v11 = vsub.s32 %v56_v7, %v27_v3  ;;  %vm171_vm8 = vcmask 7168  }
  0x18   :  { %v29_v14 = vrot.slane %v20_v9, %v28_v8  ;;  %v44_v16 = vrot.slane %v21_v10, %v28_v8  ;;  %v36_v19 = vrot.slane %v22_v13, %v28_v8  ;;  %v51_v20 = vrot.slane %v37_v15, %v28_v8 }
  0x1a   :  { %v52_v17 = vcombine.low %v29_v14, %v44_v16  ;;  %v53_v18 = vcombine.high %v29_v14, %v44_v16  ;;  %v68_v23 = vcombine.low %v36_v19, %v51_v20  ;;  %v69_v24 = vcombine.high %v36_v19, %v51_v20 }
  0x1c   :  { %v60_v21 = vrot.slane %v52_v17, %v59_v11  ;;  %v67_v22 = vrot.slane %v53_v18, %v59_v11  ;;  %v76_v27 = vrot.slane %v68_v23, %v59_v11  ;;  %v83_v28 = vrot.slane %v69_v24, %v59_v11 }
  0x1e   :  { %v84_v25 = vcombine.high %v60_v21, %v209_v12  ;;  %v89_v26 = vsel %vm88_vm0, %v60_v21, 0.0  ;;  %v85_v30 = vcombine.high %v67_v22, %v209_v12  ;;  %v103_v31 = vsel %vm88_vm0, %v67_v22, 0.0 }
  0x1f   :  { %v90_v29 = vrot.slane %v89_v26, 4  ;;  %v86_v32 = vcombine.high %v76_v27, %v209_v12  ;;  %v87_v33 = vcombine.high %v83_v28, %v209_v12  ;;  %v104_v35 = vrot.slane %v103_v31, 4 }
  0x20   :  { %v96_v34 = vsel %vm88_vm0, %v84_v25, 0.0  ;;  %v110_v38 = vsel %vm88_vm0, %v85_v30, 0.0  ;;  %v117_v39 = vsel %vm88_vm0, %v76_v27, 0.0  ;;  %v131_v47 = vsel %vm88_vm0, %v83_v28, 0.0 }
  0x21   :  { %v91_v36 = vadd.f32 %v90_v29, %v89_v26  ;;  %v97_v37 = vrot.slane %v96_v34, 4  ;;  %v105_v40 = vadd.f32 %v104_v35, %v103_v31  ;;  %v111_v41 = vrot.slane %v110_v38, 4 }
  0x22   :  { %v118_v42 = vrot.slane %v117_v39, 4  ;;  %v124_v43 = vsel %vm88_vm0, %v86_v32, 0.0  ;;  %v132_v51 = vrot.slane %v131_v47, 4  ;;  %v138_v55 = vsel %vm88_vm0, %v87_v33, 0.0 }
  0x23   :  { %v92_v44 = vrot.slane %v91_v36, 2  ;;  %v98_v45 = vadd.f32 %v97_v37, %v96_v34  ;;  %v125_v46 = vrot.slane %v124_v43, 4  ;;  %v106_v48 = vrot.slane %v105_v40, 2 }
  0x24   :  { %v112_v49 = vadd.f32 %v111_v41, %v110_v38  ;;  %v119_v50 = vadd.f32 %v118_v42, %v117_v39  ;;  %v133_v59 = vadd.f32 %v132_v51, %v131_v47  ;;  %v139_v63 = vrot.slane %v138_v55, 4 }
  0x25   :  { %v93_v52 = vadd.f32 %v92_v44, %v91_v36  ;;  %v99_v53 = vrot.slane %v98_v45, 2  ;;  %v126_v54 = vadd.f32 %v125_v46, %v124_v43  ;;  %v107_v56 = vadd.f32 %v106_v48, %v105_v40 }
  0x26   :  { %v113_v57 = vrot.slane %v112_v49, 2  ;;  %v120_v58 = vrot.slane %v119_v50, 2  ;;  %v134_v3 = vrot.slane %v133_v59, 2  ;;  %v140_v7 = vadd.f32 %v139_v63, %v138_v55 }
  0x27   :  { %v94_v60 = vrot.slane %v93_v52, 1  ;;  %v100_v61 = vadd.f32 %v99_v53, %v98_v45  ;;  %v127_v62 = vrot.slane %v126_v54, 2  ;;  %v108_v0 = vrot.slane %v107_v56, 1 }
  0x28   :  { %v114_v1 = vadd.f32 %v113_v57, %v112_v49  ;;  %v121_v2 = vadd.f32 %v120_v58, %v119_v50  ;;  %v135_v11 = vadd.f32 %v134_v3, %v133_v59  ;;  %v141_v14 = vrot.slane %v140_v7, 2 }
  0x29   :  { %v95_v4 = vadd.f32 %v94_v60, %v93_v52  ;;  %v101_v5 = vrot.slane %v100_v61, 1  ;;  %v128_v6 = vadd.f32 %v127_v62, %v126_v54  ;;  %v109_v8 = vadd.f32 %v108_v0, %v107_v56 }
  0x2a   :  { %v115_v9 = vrot.slane %v114_v1, 1  ;;  %v122_v10 = vrot.slane %v121_v2, 1  ;;  %v136_v17 = vrot.slane %v135_v11, 1  ;;  %v142_v19 = vadd.f32 %v141_v14, %v140_v7 }
  0x2b   :  { %v102_v12 = vadd.f32 %v101_v5, %v100_v61  ;;  %v129_v13 = vrot.slane %v128_v6, 1 }
  0x2c   :  { %v116_v15 = vadd.f32 %v115_v9, %v114_v1  ;;  %v123_v16 = vadd.f32 %v122_v10, %v121_v2  ;;  %v137_v21 = vadd.f32 %v136_v17, %v135_v11  ;;  %v143_v23 = vrot.slane %v142_v19, 1 }
  0x2d   :  { %v130_v18 = vadd.f32 %v129_v13, %v128_v6  ;;  %v154_v20 = vsel %vm153_vm1, %v102_v12, %v95_v4 }
  0x2e   :  { %v156_v22 = vsel %vm155_vm2, %v109_v8, %v154_v20  ;;  %v144_v26 = vadd.f32 %v143_v23, %v142_v19 }
  0x2f   :  { %v158_v24 = vsel %vm157_vm3, %v116_v15, %v156_v22 }
  0x30   :  { %v160_v25 = vsel %vm159_vm4, %v123_v16, %v158_v24 }
  0x31   :  { %v162_v27 = vsel %vm161_vm5, %v130_v18, %v160_v25 }
  0x32   :  { %v164_v28 = vsel %vm163_vm6, %v137_v21, %v162_v27 }
  0x33   :  { %v166_v29 = vsel %vm165_vm7, %v144_v26, %v164_v28 }
  0x34   :  { %168 = vadd.xlane.f32.xlu0 %v166_v29 }
  0xc1   :  { %v169_v30 = vpop.xlane.xlu0 %168 }
  0xc2   :  { %v170_v31 = vmul.f32 0.00390625, %v169_v30 }
  0xc4   :  { %172 = vst.msk [vmem:[%s245_s1] sm:$0xff] %vm171_vm8, %v170_v31 }
  0xc5   :  { %177 = vsyncpa [#allocation3], 1 }

</bundles_post_ra>
